<compile_context>
chip_gen: v5e
topology: v5e:2x2
jax: 0.10.0
libtpu: 0.0.40
codegen_flags: <defaults>
</compile_context>

<pallas_src>
import math

import jax
import jax.numpy as jnp
from jax.experimental import pallas as pl
from jax.experimental.pallas import tpu as pltpu

IN_DIM = 28 * 28          # 784
H1_DIM = 256
H2_DIM = 64
OUT_DIM = 10
H2_PAD = 128              # lane-dense padding of the 64-wide hidden
OUT_PAD = 128             # lane-dense padding of the 10-wide output


def _round_up(n, m):
    return ((n + m - 1) // m) * m


def mlp_kernel(x_ref, w1_ref, b1_ref, w2_ref, b2_ref, w3_ref, b3_ref, o_ref):
    # x tile: (TB, 784) bf16; weights bf16; biases f32.
    x = x_ref[...]

    # fc1 + ReLU  (MXU bf16 -> f32 accumulate, VPU bias/relu in f32)
    h1 = jnp.dot(x, w1_ref[...], preferred_element_type=jnp.float32) + b1_ref[...]
    h1 = jnp.maximum(h1, 0.0).astype(jnp.bfloat16)

    # fc2 + ReLU  (output padded to 128 lanes; padded cols are exactly 0)
    h2 = jnp.dot(h1, w2_ref[...], preferred_element_type=jnp.float32) + b2_ref[...]
    h2 = jnp.maximum(h2, 0.0).astype(jnp.bfloat16)

    # fc3  (K and N padded to 128; padded rows/cols of w3/b3 are zero)
    out = jnp.dot(h2, w3_ref[...], preferred_element_type=jnp.float32) + b3_ref[...]
    o_ref[...] = out.astype(o_ref.dtype)


def _prepare_padded_params(params):
    """Pad narrow dims to 128 lanes and cast weights to bf16 (biases stay f32)."""
    w1 = params["w1"].astype(jnp.bfloat16)                      # (784, 256)
    b1 = params["b1"].astype(jnp.float32)                       # (1, 256)

    w2 = jnp.zeros((H1_DIM, H2_PAD), jnp.float32).at[:, :H2_DIM].set(params["w2"])
    b2 = jnp.zeros((1, H2_PAD), jnp.float32).at[:, :H2_DIM].set(params["b2"])

    w3 = jnp.zeros((H2_PAD, OUT_PAD), jnp.float32).at[:H2_DIM, :OUT_DIM].set(params["w3"])
    b3 = jnp.zeros((1, OUT_PAD), jnp.float32).at[:, :OUT_DIM].set(params["b3"])

    return (w1, b1, w2.astype(jnp.bfloat16), b2,
            w3.astype(jnp.bfloat16), b3)


def net_forward(x, params, *, tb=512):
    """x: (B, 784) float32. params: dict of w1,b1,w2,b2,w3,b3 (f32, (in,out))."""
    B = x.shape[0]

    # Batch tile: large for throughput, but never bigger than the (8-aligned)
    # padded batch for small B.
    TB = tb if B >= tb else _round_up(B, 8)
    B_pad = _round_up(B, TB)

    # Host-side: pad ragged batch with zero rows, cast streamed x to bf16.
    x_p = jnp.zeros((B_pad, IN_DIM), jnp.bfloat16).at[:B].set(x.astype(jnp.bfloat16))
    w1, b1, w2, b2, w3, b3 = _prepare_padded_params(params)

    grid = (B_pad // TB,)
    const = lambda i: (0, 0)   # weights/biases: same block every step -> VMEM-resident

    flops = 2 * B_pad * (IN_DIM * H1_DIM + H1_DIM * H2_PAD + H2_PAD * OUT_PAD)
    bytes_accessed = (
        B_pad * IN_DIM * 2                                     # streamed x (bf16)
        + (IN_DIM * H1_DIM + H1_DIM * H2_PAD + H2_PAD * OUT_PAD) * 2   # weights (bf16)
        + (H1_DIM + H2_PAD + OUT_PAD) * 4                      # biases (f32)
        + B_pad * OUT_PAD * 4                                  # output (f32)
    )

    out_padded = pl.pallas_call(
        mlp_kernel,
        out_shape=jax.ShapeDtypeStruct((B_pad, OUT_PAD), jnp.float32),
        grid=grid,
        in_specs=[
            pl.BlockSpec((TB, IN_DIM), lambda i: (i, 0)),     # x: streamed per tile
            pl.BlockSpec((IN_DIM, H1_DIM), const),            # w1
            pl.BlockSpec((1, H1_DIM), const),                 # b1
            pl.BlockSpec((H1_DIM, H2_PAD), const),            # w2 (padded)
            pl.BlockSpec((1, H2_PAD), const),                 # b2 (padded)
            pl.BlockSpec((H2_PAD, OUT_PAD), const),           # w3 (padded)
            pl.BlockSpec((1, OUT_PAD), const),                # b3 (padded)
        ],
        out_specs=pl.BlockSpec((TB, OUT_PAD), lambda i: (i, 0)),
        compiler_params=pltpu.CompilerParams(
            dimension_semantics=("parallel",),                # v7x: 2 TCs split the batch
            vmem_limit_bytes=32 * 1024 * 1024,
        ),
        cost_estimate=pl.CostEstimate(
            flops=flops, bytes_accessed=bytes_accessed, transcendentals=0),
    )(x_p, w1, b1, w2, b2, w3, b3)

    return out_padded[:B, :OUT_DIM]


def init_params(key):
    """Deterministic init mimicking nn.Linear's default:
    W, b ~ U(-1/sqrt(fan_in), 1/sqrt(fan_in)). Stored as (in, out)."""
    dims = [(IN_DIM, H1_DIM), (H1_DIM, H2_DIM), (H2_DIM, OUT_DIM)]
    params = {}
    for i, (fan_in, fan_out) in enumerate(dims, start=1):
        key, kw, kb = jax.random.split(key, 3)
        bound = 1.0 / math.sqrt(fan_in)
        params[f"w{i}"] = jax.random.uniform(
            kw, (fan_in, fan_out), jnp.float32, -bound, bound)
        params[f"b{i}"] = jax.random.uniform(
            kb, (1, fan_out), jnp.float32, -bound, bound)
    return params


def reference_forward(x, params):
    """Pure-JAX reference using the same bf16-operand / f32-accumulate recipe."""
    xb = x.astype(jnp.bfloat16)
    w1 = params["w1"].astype(jnp.bfloat16)
    w2 = params["w2"].astype(jnp.bfloat16)
    w3 = params["w3"].astype(jnp.bfloat16)
    h1 = jnp.maximum(
        jnp.dot(xb, w1, preferred_element_type=jnp.float32) + params["b1"], 0.0
    ).astype(jnp.bfloat16)
    h2 = jnp.maximum(
        jnp.dot(h1, w2, preferred_element_type=jnp.float32) + params["b2"], 0.0
    ).astype(jnp.bfloat16)
    return jnp.dot(h2, w3, preferred_element_type=jnp.float32) + params["b3"]


if __name__ == "__main__":
    key = jax.random.PRNGKey(0)
    key, kx = jax.random.split(key)

    B = 8
    x = jax.random.normal(kx, (B, IN_DIM), jnp.float32)
    params = init_params(key)

    out = net_forward(x, params)
    out = jax.block_until_ready(out)
    assert out.shape == (B, OUT_DIM)

    # Sanity check against a pure-JAX reference with matching bf16 precision.
    ref = reference_forward(x, params)
    assert jnp.allclose(out, ref, atol=2e-3, rtol=2e-3), "mismatch vs reference"

    print("KERNEL_OK")
</pallas_src>

<mosaic_0001>
module attributes {stable_mosaic.version = 11 : i64} {
  func.func @mlp_kernel(%arg0: i32, %arg1: memref<8x784xbf16, #tpu.memory_space<vmem>>, %arg2: memref<784x256xbf16, #tpu.memory_space<vmem>>, %arg3: memref<1x256xf32, #tpu.memory_space<vmem>>, %arg4: memref<256x128xbf16, #tpu.memory_space<vmem>>, %arg5: memref<1x128xf32, #tpu.memory_space<vmem>>, %arg6: memref<128x128xbf16, #tpu.memory_space<vmem>>, %arg7: memref<1x128xf32, #tpu.memory_space<vmem>>, %arg8: memref<8x128xf32, #tpu.memory_space<vmem>>) attributes {dimension_semantics = [#tpu.dimension_semantics<parallel>], iteration_bounds = array<i64: 1>, scalar_prefetch = 0 : i64, scratch_operands = 0 : i64, tpu.core_type = #tpu.core_type<tc>, window_params = [{transform_indices = @transform_0, window_bounds = array<i64: 8, 784>}, {pipeline_mode = #tpu.pipeline_mode<synchronous>, transform_indices = @transform_1, window_bounds = array<i64: 784, 256>}, {pipeline_mode = #tpu.pipeline_mode<synchronous>, transform_indices = @transform_2, window_bounds = array<i64: 1, 256>}, {pipeline_mode = #tpu.pipeline_mode<synchronous>, transform_indices = @transform_3, window_bounds = array<i64: 256, 128>}, {pipeline_mode = #tpu.pipeline_mode<synchronous>, transform_indices = @transform_4, window_bounds = array<i64: 1, 128>}, {pipeline_mode = #tpu.pipeline_mode<synchronous>, transform_indices = @transform_5, window_bounds = array<i64: 128, 128>}, {pipeline_mode = #tpu.pipeline_mode<synchronous>, transform_indices = @transform_6, window_bounds = array<i64: 1, 128>}, {transform_indices = @transform_7, window_bounds = array<i64: 8, 128>}]} {
    %c0 = arith.constant 0 : index
    %c0_0 = arith.constant 0 : index
    %0 = vector.load %arg1[%c0, %c0_0] : memref<8x784xbf16, #tpu.memory_space<vmem>>, vector<8x784xbf16>
    %c0_1 = arith.constant 0 : index
    %c0_2 = arith.constant 0 : index
    %1 = vector.load %arg2[%c0_1, %c0_2] : memref<784x256xbf16, #tpu.memory_space<vmem>>, vector<784x256xbf16>
    %cst = arith.constant dense<0.000000e+00> : vector<8x256xf32>
    %2 = tpu.matmul %0, %1, %cst {dimension_numbers = #tpu.dot_dimension_numbers<[1], [0], [0], [1], [0, 0, 1, 1], [], []>} : vector<8x784xbf16>, vector<784x256xbf16>, vector<8x256xf32> -> vector<8x256xf32>
    %c0_3 = arith.constant 0 : index
    %c0_4 = arith.constant 0 : index
    %3 = vector.load %arg3[%c0_3, %c0_4] : memref<1x256xf32, #tpu.memory_space<vmem>>, vector<1x256xf32>
    %4 = vector.broadcast %3 : vector<1x256xf32> to vector<8x256xf32>
    %5 = arith.addf %2, %4 : vector<8x256xf32>
    %cst_5 = arith.constant 0.000000e+00 : f32
    %6 = vector.broadcast %cst_5 : f32 to vector<8x256xf32>
    %7 = arith.maximumf %5, %6 : vector<8x256xf32>
    %8 = arith.truncf %7 : vector<8x256xf32> to vector<8x256xbf16>
    %c0_6 = arith.constant 0 : index
    %c0_7 = arith.constant 0 : index
    %9 = vector.load %arg4[%c0_6, %c0_7] : memref<256x128xbf16, #tpu.memory_space<vmem>>, vector<256x128xbf16>
    %cst_8 = arith.constant dense<0.000000e+00> : vector<8x128xf32>
    %10 = tpu.matmul %8, %9, %cst_8 {dimension_numbers = #tpu.dot_dimension_numbers<[1], [0], [0], [1], [0, 0, 1, 1], [], []>} : vector<8x256xbf16>, vector<256x128xbf16>, vector<8x128xf32> -> vector<8x128xf32>
    %c0_9 = arith.constant 0 : index
    %c0_10 = arith.constant 0 : index
    %11 = vector.load %arg5[%c0_9, %c0_10] : memref<1x128xf32, #tpu.memory_space<vmem>>, vector<1x128xf32>
    %12 = vector.broadcast %11 : vector<1x128xf32> to vector<8x128xf32>
    %13 = arith.addf %10, %12 : vector<8x128xf32>
    %cst_11 = arith.constant 0.000000e+00 : f32
    %14 = vector.broadcast %cst_11 : f32 to vector<8x128xf32>
    %15 = arith.maximumf %13, %14 : vector<8x128xf32>
    %16 = arith.truncf %15 : vector<8x128xf32> to vector<8x128xbf16>
    %c0_12 = arith.constant 0 : index
    %c0_13 = arith.constant 0 : index
    %17 = vector.load %arg6[%c0_12, %c0_13] : memref<128x128xbf16, #tpu.memory_space<vmem>>, vector<128x128xbf16>
    %cst_14 = arith.constant dense<0.000000e+00> : vector<8x128xf32>
    %18 = tpu.matmul %16, %17, %cst_14 {dimension_numbers = #tpu.dot_dimension_numbers<[1], [0], [0], [1], [0, 0, 1, 1], [], []>} : vector<8x128xbf16>, vector<128x128xbf16>, vector<8x128xf32> -> vector<8x128xf32>
    %c0_15 = arith.constant 0 : index
    %c0_16 = arith.constant 0 : index
    %19 = vector.load %arg7[%c0_15, %c0_16] : memref<1x128xf32, #tpu.memory_space<vmem>>, vector<1x128xf32>
    %20 = vector.broadcast %19 : vector<1x128xf32> to vector<8x128xf32>
    %21 = arith.addf %18, %20 : vector<8x128xf32>
    %c0_17 = arith.constant 0 : index
    %c0_18 = arith.constant 0 : index
    %22 = vector.load %arg8[%c0_17, %c0_18] : memref<8x128xf32, #tpu.memory_space<vmem>>, vector<8x128xf32>
    tpu.vector_store %arg8[%c0_17, %c0_18], %21 {strides = array<i32>} : memref<8x128xf32, #tpu.memory_space<vmem>>, vector<8x128xf32>,
    return
  }
  func.func @transform_0(%arg0: i32) -> (i32, i32) {
    %c0_i32 = arith.constant 0 : i32
    %c0_i32_0 = arith.constant 0 : i32
    return %arg0, %c0_i32 : i32, i32
  }
  func.func @transform_1(%arg0: i32) -> (i32, i32) {
    %c0_i32 = arith.constant 0 : i32
    %c0_i32_0 = arith.constant 0 : i32
    %c0_i32_1 = arith.constant 0 : i32
    return %c0_i32, %c0_i32_0 : i32, i32
  }
  func.func @transform_2(%arg0: i32) -> (i32, i32) {
    %c0_i32 = arith.constant 0 : i32
    %c0_i32_0 = arith.constant 0 : i32
    %c0_i32_1 = arith.constant 0 : i32
    return %c0_i32, %c0_i32_0 : i32, i32
  }
  func.func @transform_3(%arg0: i32) -> (i32, i32) {
    %c0_i32 = arith.constant 0 : i32
    %c0_i32_0 = arith.constant 0 : i32
    %c0_i32_1 = arith.constant 0 : i32
    return %c0_i32, %c0_i32_0 : i32, i32
  }
  func.func @transform_4(%arg0: i32) -> (i32, i32) {
    %c0_i32 = arith.constant 0 : i32
    %c0_i32_0 = arith.constant 0 : i32
    %c0_i32_1 = arith.constant 0 : i32
    return %c0_i32, %c0_i32_0 : i32, i32
  }
  func.func @transform_5(%arg0: i32) -> (i32, i32) {
    %c0_i32 = arith.constant 0 : i32
    %c0_i32_0 = arith.constant 0 : i32
    %c0_i32_1 = arith.constant 0 : i32
    return %c0_i32, %c0_i32_0 : i32, i32
  }
  func.func @transform_6(%arg0: i32) -> (i32, i32) {
    %c0_i32 = arith.constant 0 : i32
    %c0_i32_0 = arith.constant 0 : i32
    %c0_i32_1 = arith.constant 0 : i32
    return %c0_i32, %c0_i32_0 : i32, i32
  }
  func.func @transform_7(%arg0: i32) -> (i32, i32) {
    %c0_i32 = arith.constant 0 : i32
    %c0_i32_0 = arith.constant 0 : i32
    return %arg0, %c0_i32 : i32, i32
  }
}

</mosaic_0001>

<bundles_post_ra>
// kernel: tpu_custom_call.1
= control target key start
LH: loop header
LB: loop body
LE: loop exit
PB: predicated region body
PF: predicated region fallthrough
CT: control target
= control target key end

     0   :  { %12 = vsyncpa [#allocation3], 0  ;;  %s2055_s0 = inlined_call_operand.hbm [shape: bf16[8,784], index: 0, kind: input, shape index: {}]   ;;  %s2056_s1 = inlined_call_operand.hbm [shape: bf16[784,256], index: 1, kind: input, shape index: {}]   ;;  %s2057_s2 = inlined_call_operand.hbm [shape: f32[1,256], index: 2, kind: input, shape index: {}]   ;;  %s2058_s3 = inlined_call_operand.hbm [shape: bf16[256,128], index: 3, kind: input, shape index: {}]   ;;  %s2059_s4 = inlined_call_operand.vmem [shape: f32[1,128], index: 4, kind: input, shape index: {}]   ;;  %s2060_s5 = inlined_call_operand.hbm [shape: bf16[128,128], index: 5, kind: input, shape index: {}]   ;;  %s2061_s6 = inlined_call_operand.vmem [shape: f32[1,128], index: 6, kind: input, shape index: {}]   ;;  %s2062_s7 = inlined_call_operand.hbm [shape: f32[8,128], index: 7, kind: output, shape index: {}]  }
   0x1   :  { %13 = vsyncpa [#allocation6], 0 }
   0x2   :  { %14 = vsyncpa [#allocation9], 0  ;;  %s31_s26 = sshll.u32 %s2056_s1, 4  ;;  %s32_s26 = int_to_ptr.hbm [resolvable:$true] %s31_s26 }
   0x3   :  { %15 = vsyncpa [#allocation4], 0  ;;  %s1951_s27 = smov [#allocation5]   ;;  %s55_s8 = sshll.u32 %s2058_s3, 4  ;;  %s56_s8 = int_to_ptr.hbm [resolvable:$true] %s55_s8 }
   0x4   :  { %s33_s28 = sshll.u32 %s1951_s27, 4  ;;  %s1952_s9 = smov 128   ;;  %s34_s28 = int_to_ptr.vmem [resolvable:$true] %s33_s28 }
   0x5   :  { %s1953_s10 = smov 8   ;;  %s1954_s11 = smov [#allocation8]  }
   0x6   :  { %39 = dma.hbm_to_vmem [thread:$0]  %s32_s26, 12544, %s34_s28, [#allocation6], %s1952_s9, %s1952_s9, %s1953_s10  }
   0x7   :  { %s57_s12 = sshll.u32 %s1954_s11, 4  ;;  %s1955_s13 = smov 64   ;;  %s58_s12 = int_to_ptr.vmem [resolvable:$true] %s57_s12 }
   0x8   :  { %s1956_s14 = smov 4   ;;  %s21_s16 = sshll.u32 %s2055_s0, 4  ;;  %s22_s16 = int_to_ptr.hbm [resolvable:$true] %s21_s16 }
   0x9   :  { %63 = dma.hbm_to_vmem [thread:$0]  %s56_s8, 2048, %s58_s12, [#allocation9], %s1955_s13, %s1955_s13, %s1956_s14  }
   0xa   :  { %s1957_s17 = smov [#allocation2]   ;;  %s45_s20 = sshll.u32 %s2057_s2, 4  ;;  %s46_s20 = int_to_ptr.hbm [resolvable:$true] %s45_s20 }
   0xb   :  { %s23_s18 = sshll.u32 %s1957_s17, 4  ;;  %s1958_s21 = smov [#allocation7]   ;;  %s24_s18 = int_to_ptr.vmem [resolvable:$true] %s23_s18 }
   0xc   :  { %26 = dma.hbm_to_vmem [thread:$0]  %s22_s16, 448, %s24_s18, [#allocation3]  }
   0xd   :  { %s47_s22 = sshll.u32 %s1958_s21, 4  ;;  %s70_s25 = sshll.u32 %s2060_s5, 4  ;;  %s48_s22 = int_to_ptr.vmem [resolvable:$true] %s47_s22  ;;  %s71_s25 = int_to_ptr.hbm [resolvable:$true] %s70_s25 }
   0xe   :  { %50 = dma.hbm_to_vmem [thread:$0]  %s46_s20, 32, %s48_s22, [#allocation6]  }
   0xf   :  { %s1959_s0 = smov [#allocation10]  }
  0x10   :  { %s72_s26 = sshll.u32 %s1959_s0, 4  ;;  %s73_s26 = int_to_ptr.vmem [resolvable:$true] %s72_s26 }
  0x11   :  { %78 = dma.hbm_to_vmem [thread:$0]  %s71_s25, 1024, %s73_s26, [#allocation9], %s1955_s13, %s1955_s13, %s1956_s14  }
  0x12   :  { %1943 = dma.done.wait [#allocation3], 448  }
  0x13   :  { %1944 = vsyncadd [#allocation3], 4294966848 }
  0x14   :  { %1945 = dma.done.wait [#allocation6], 12576  }
  0x15   :  { %1946 = vsyncadd [#allocation6], 4294954720 }
  0x16   :  { %1947 = dma.done.wait [#allocation9], 3072  }
  0x17   :  { %1948 = vsyncadd [#allocation9], 4294964224  ;;  %v1233_v0 = vld [vmem:[#allocation5 + $0x70] sm:$0xf]  ;;  %v1680_v1 = vld [vmem:[#allocation5 + $0x74] sm:$0xf0] }
  0x18   :  { %v1361_v2 = vld [vmem:[#allocation5 + $0x170] sm:$0xf]  ;;  %v1234_v3 = vor.u32 %v1680_v1, %v1233_v0  ;;  %v1712_v4 = vld [vmem:[#allocation5 + $0x174] sm:$0xf0]  ;;  %v1225_v11 = vld [vmem:[#allocation5 + $0x60] sm:$0xf] }
  0x19   :  { %v1425_v5 = vld [vmem:[#allocation5 + $0x1f0] sm:$0xf]  ;;  %v1728_v6 = vld [vmem:[#allocation5 + $0x1f4] sm:$0xf0]  ;;  %v1362_v7 = vor.u32 %v1712_v4, %v1361_v2  ;;  %v1678_v13 = vld [vmem:[#allocation5 + $0x64] sm:$0xf0] }
  0x1a   :  { %v1426_v8 = vor.u32 %v1728_v6, %v1425_v5  ;;  %v1297_v9 = vld [vmem:[#allocation5 + $0xf0] sm:$0xf]  ;;  %v1696_v10 = vld [vmem:[#allocation5 + $0xf4] sm:$0xf0]  ;;  %728 = vmatpush.bf16.msra.mxu0 %v1234_v3  ;;  %v1353_v14 = vld [vmem:[#allocation5 + $0x160] sm:$0xf]  ;;  %v1226_v16 = vor.u32 %v1678_v13, %v1225_v11 }
  0x1b   :  { %v1298_v12 = vor.u32 %v1696_v10, %v1297_v9  ;;  %v1710_v15 = vld [vmem:[#allocation5 + $0x164] sm:$0xf0]  ;;  %754 = vmatpush.bf16.msra.mxu2 %v1362_v7  ;;  %v1417_v18 = vld [vmem:[#allocation5 + $0x1e0] sm:$0xf]  ;;  %v1217_v23 = vld [vmem:[#allocation5 + $0x50] sm:$0xf] }
  0x1c   :  { %767 = vmatpush.bf16.msra.mxu3 %v1426_v8  ;;  %v1354_v17 = vor.u32 %v1710_v15, %v1353_v14  ;;  %v1726_v19 = vld [vmem:[#allocation5 + $0x1e4] sm:$0xf0]  ;;  %v1289_v20 = vld [vmem:[#allocation5 + $0xe0] sm:$0xf]  ;;  %v1676_v24 = vld [vmem:[#allocation5 + $0x54] sm:$0xf0] }
  0x1d   :  { %741 = vmatpush.bf16.msra.mxu1 %v1298_v12  ;;  %v1418_v21 = vor.u32 %v1726_v19, %v1417_v18  ;;  %v1694_v22 = vld [vmem:[#allocation5 + $0xe4] sm:$0xf0]  ;;  %v1345_v26 = vld [vmem:[#allocation5 + $0x150] sm:$0xf]  ;;  %v1708_v27 = vld [vmem:[#allocation5 + $0x154] sm:$0xf0]  ;;  %v1218_v29 = vor.u32 %v1676_v24, %v1217_v23 }
  0x1e   :  { %v1290_v25 = vor.u32 %v1694_v22, %v1289_v20  ;;  %v1409_v28 = vld [vmem:[#allocation5 + $0x1d0] sm:$0xf]  ;;  %729 = vmatpush.bf16.msra.mxu0 %v1226_v16  ;;  %v1724_v30 = vld [vmem:[#allocation5 + $0x1d4] sm:$0xf0]  ;;  %v1346_v33 = vor.u32 %v1708_v27, %v1345_v26  ;;  %v1209_v35 = vld [vmem:[#allocation5 + $0x40] sm:$0xf] }
  0x1f   :  { %v1281_v31 = vld [vmem:[#allocation5 + $0xd0] sm:$0xf]  ;;  %v1692_v32 = vld [vmem:[#allocation5 + $0xd4] sm:$0xf0]  ;;  %755 = vmatpush.bf16.msra.mxu2 %v1354_v17  ;;  %v1410_v34 = vor.u32 %v1724_v30, %v1409_v28  ;;  %v1674_v36 = vld [vmem:[#allocation5 + $0x44] sm:$0xf0] }
  0x20   :  { %768 = vmatpush.bf16.msra.mxu3 %v1418_v21  ;;  %v1337_v37 = vld [vmem:[#allocation5 + $0x140] sm:$0xf]  ;;  %v1282_v38 = vor.u32 %v1692_v32, %v1281_v31  ;;  %v1706_v39 = vld [vmem:[#allocation5 + $0x144] sm:$0xf0]  ;;  %v1210_v44 = vor.u32 %v1674_v36, %v1209_v35  ;;  %v1201_v47 = vld [vmem:[#allocation5 + $0x30] sm:$0xf] }
  0x21   :  { %742 = vmatpush.bf16.msra.mxu1 %v1290_v25  ;;  %v1401_v40 = vld [vmem:[#allocation5 + $0x1c0] sm:$0xf]  ;;  %v1722_v41 = vld [vmem:[#allocation5 + $0x1c4] sm:$0xf0]  ;;  %v1338_v45 = vor.u32 %v1706_v39, %v1337_v37  ;;  %v1672_v48 = vld [vmem:[#allocation5 + $0x34] sm:$0xf0] }
  0x22   :  { %v1273_v42 = vld [vmem:[#allocation5 + $0xc0] sm:$0xf]  ;;  %v1690_v43 = vld [vmem:[#allocation5 + $0xc4] sm:$0xf0]  ;;  %730 = vmatpush.bf16.msra.mxu0 %v1218_v29  ;;  %v1402_v46 = vor.u32 %v1722_v41, %v1401_v40  ;;  %v1329_v49 = vld [vmem:[#allocation5 + $0x130] sm:$0xf]  ;;  %v1202_v56 = vor.u32 %v1672_v48, %v1201_v47 }
  0x23   :  { %756 = vmatpush.bf16.msra.mxu2 %v1346_v33  ;;  %v1274_v50 = vor.u32 %v1690_v43, %v1273_v42  ;;  %v1704_v51 = vld [vmem:[#allocation5 + $0x134] sm:$0xf0]  ;;  %v1393_v52 = vld [vmem:[#allocation5 + $0x1b0] sm:$0xf]  ;;  %v1193_v59 = vld [vmem:[#allocation5 + $0x20] sm:$0xf] }
  0x24   :  { %769 = vmatpush.bf16.msra.mxu3 %v1410_v34  ;;  %v1720_v53 = vld [vmem:[#allocation5 + $0x1b4] sm:$0xf0]  ;;  %v1265_v54 = vld [vmem:[#allocation5 + $0xb0] sm:$0xf]  ;;  %v1330_v57 = vor.u32 %v1704_v51, %v1329_v49  ;;  %v1670_v60 = vld [vmem:[#allocation5 + $0x24] sm:$0xf0] }
  0x25   :  { %743 = vmatpush.bf16.msra.mxu1 %v1282_v38  ;;  %v1688_v55 = vld [vmem:[#allocation5 + $0xb4] sm:$0xf0]  ;;  %v1394_v58 = vor.u32 %v1720_v53, %v1393_v52  ;;  %v1321_v61 = vld [vmem:[#allocation5 + $0x120] sm:$0xf]  ;;  %v1702_v63 = vld [vmem:[#allocation5 + $0x124] sm:$0xf0]  ;;  %v1194_v4 = vor.u32 %v1670_v60, %v1193_v59 }
  0x26   :  { %731 = vmatpush.bf16.msra.mxu0 %v1210_v44  ;;  %v1266_v62 = vor.u32 %v1688_v55, %v1265_v54  ;;  %v1385_v0 = vld [vmem:[#allocation5 + $0x1a0] sm:$0xf]  ;;  %v1718_v1 = vld [vmem:[#allocation5 + $0x1a4] sm:$0xf0]  ;;  %v1322_v5 = vor.u32 %v1702_v63, %v1321_v61  ;;  %v1185_v7 = vld [vmem:[#allocation5 + $0x10] sm:$0xf] }
  0x27   :  { %757 = vmatpush.bf16.msra.mxu2 %v1338_v45  ;;  %v1257_v2 = vld [vmem:[#allocation5 + $0xa0] sm:$0xf]  ;;  %v1686_v3 = vld [vmem:[#allocation5 + $0xa4] sm:$0xf0]  ;;  %v1386_v6 = vor.u32 %v1718_v1, %v1385_v0  ;;  %v1668_v8 = vld [vmem:[#allocation5 + $0x14] sm:$0xf0] }
  0x28   :  { %770 = vmatpush.bf16.msra.mxu3 %v1402_v46  ;;  %v1313_v9 = vld [vmem:[#allocation5 + $0x110] sm:$0xf]  ;;  %v1258_v10 = vor.u32 %v1686_v3, %v1257_v2  ;;  %v1700_v11 = vld [vmem:[#allocation5 + $0x114] sm:$0xf0]  ;;  %v1177_v16 = vld [vmem:[#allocation5] sm:$0xf]  ;;  %v1186_v17 = vor.u32 %v1668_v8, %v1185_v7 }
  0x29   :  { %744 = vmatpush.bf16.msra.mxu1 %v1274_v50  ;;  %v1377_v12 = vld [vmem:[#allocation5 + $0x190] sm:$0xf]  ;;  %v1716_v13 = vld [vmem:[#allocation5 + $0x194] sm:$0xf0]  ;;  %v1666_v18 = vld [vmem:[#allocation5 + $0x4] sm:$0xf0]  ;;  %v1314_v21 = vor.u32 %v1700_v11, %v1313_v9 }
  0x2a   :  { %732 = vmatpush.bf16.msra.mxu0 %v1202_v56  ;;  %v1249_v14 = vld [vmem:[#allocation5 + $0x90] sm:$0xf]  ;;  %v1684_v15 = vld [vmem:[#allocation5 + $0x94] sm:$0xf0]  ;;  %v1305_v19 = vld [vmem:[#allocation5 + $0x100] sm:$0xf]  ;;  %v1378_v22 = vor.u32 %v1716_v13, %v1377_v12  ;;  %v1178_v33 = vor.u32 %v1666_v18, %v1177_v16 }
  0x2b   :  { %758 = vmatpush.bf16.msra.mxu2 %v1330_v57  ;;  %v1698_v20 = vld [vmem:[#allocation5 + $0x104] sm:$0xf0]  ;;  %v1369_v23 = vld [vmem:[#allocation5 + $0x180] sm:$0xf]  ;;  %v103_v25 = vld [vmem:[#allocation2 + $0x8] sm:$0xff]  ;;  %v1250_v26 = vor.u32 %v1684_v15, %v1249_v14  ;;  %vm724_vm0 = vcmask 130048  }
  0x2c   :  { %771 = vmatpush.bf16.msra.mxu3 %v1394_v58  ;;  %v1714_v24 = vld [vmem:[#allocation5 + $0x184] sm:$0xf0]  ;;  %v1489_v27 = vld [vmem:[#allocation5 + $0x270] sm:$0xf]  ;;  %v1744_v28 = vld [vmem:[#allocation5 + $0x274] sm:$0xf0]  ;;  %v216_v35 = vunpack.c.l.b16 %v103_v25  ;;  %v1306_v38 = vor.u32 %v1698_v20, %v1305_v19  ;;  %v217_v53 = vunpack.c.h.b16 %v103_v25 }
  0x2d   :  { %745 = vmatpush.bf16.msra.mxu1 %v1266_v62  ;;  %v1679_v29 = vld [vmem:[#allocation5 + $0x74] sm:$0xf]  ;;  %v1235_v30 = vld [vmem:[#allocation5 + $0x78] sm:$0xf0]  ;;  %v1241_v31 = vld [vmem:[#allocation5 + $0x80] sm:$0xf]  ;;  %v1370_v39 = vor.u32 %v1714_v24, %v1369_v23  ;;  %v1490_v43 = vor.u32 %v1744_v28, %v1489_v27 }
  0x2e   :  { %733 = vmatpush.bf16.msra.mxu0 %v1194_v4  ;;  %v102_v32 = vld [vmem:[#allocation2] sm:$0xff]  ;;  %v1561_v36 = vld [vmem:[#allocation5 + $0x300] sm:$0xf]  ;;  %v1553_v40 = vld [vmem:[#allocation5 + $0x2f0] sm:$0xf]  ;;  %v1238_v44 = vor.u32 %v1679_v29, %v1235_v30  ;;  %v2016_v55 = vpack.c.b16 %v216_v35, %v216_v35  ;;  %v2020_v2 = vpack.c.b16 %v217_v53, %v217_v53  ;;  %s1960_s29 = smov [#allocation11]  }
  0x2f   :  { %759 = vmatpush.bf16.msra.mxu2 %v1322_v5  ;;  %v1682_v34 = vld [vmem:[#allocation5 + $0x84] sm:$0xf0]  ;;  %v1760_v41 = vld [vmem:[#allocation5 + $0x2f4] sm:$0xf0]  ;;  %v214_v42 = vunpack.c.l.b16 %v102_v32  ;;  %v1695_v45 = vld [vmem:[#allocation5 + $0xf4] sm:$0xf]  ;;  %v215_v54 = vunpack.c.h.b16 %v102_v32 }
  0x30   :  { %772 = vmatpush.bf16.msra.mxu3 %v1386_v6  ;;  %v1762_v37 = vld [vmem:[#allocation5 + $0x304] sm:$0xf0]  ;;  %v1299_v46 = vld [vmem:[#allocation5 + $0xf8] sm:$0xf0]  ;;  %v1481_v47 = vld [vmem:[#allocation5 + $0x260] sm:$0xf]  ;;  %v1242_v48 = vor.u32 %v1682_v34, %v1241_v31  ;;  %v1554_v56 = vor.u32 %v1760_v41, %v1553_v40 }
  0x31   :  { %746 = vmatpush.bf16.msra.mxu1 %v1258_v10  ;;  %v1562_v49 = vor.u32 %v1762_v37, %v1561_v36  ;;  %v1742_v50 = vld [vmem:[#allocation5 + $0x264] sm:$0xf0]  ;;  %v1677_v51 = vld [vmem:[#allocation5 + $0x64] sm:$0xf]  ;;  %v1227_v52 = vld [vmem:[#allocation5 + $0x68] sm:$0xf0]  ;;  %v1302_v57 = vor.u32 %v1695_v45, %v1299_v46  ;;  %v2018_v58 = vpack.c.b16 %v214_v42, %v214_v42  ;;  %v2022_v3 = vpack.c.b16 %v215_v54, %v215_v54 }
  0x32   :  { %734 = vmatpush.bf16.msra.mxu0 %v1186_v17  ;;  %v1545_v59 = vld [vmem:[#allocation5 + $0x2e0] sm:$0xf]  ;;  %v1758_v60 = vld [vmem:[#allocation5 + $0x2e4] sm:$0xf0]  ;;  %v1482_v61 = vor.u32 %v1742_v50, %v1481_v47  ;;  %v1230_v62 = vor.u32 %v1677_v51, %v1227_v52  ;;  %v1693_v63 = vld [vmem:[#allocation5 + $0xe4] sm:$0xf] }
  0x33   :  { %760 = vmatpush.bf16.msra.mxu2 %v1314_v21  ;;  %v1291_v0 = vld [vmem:[#allocation5 + $0xe8] sm:$0xf0]  ;;  %v1473_v1 = vld [vmem:[#allocation5 + $0x250] sm:$0xf]  ;;  %v1740_v4 = vld [vmem:[#allocation5 + $0x254] sm:$0xf0]  ;;  %v1546_v7 = vor.u32 %v1758_v60, %v1545_v59 }
  0x34   :  { %773 = vmatpush.bf16.msra.mxu3 %v1378_v22  ;;  %v1675_v5 = vld [vmem:[#allocation5 + $0x54] sm:$0xf]  ;;  %v1219_v6 = vld [vmem:[#allocation5 + $0x58] sm:$0xf0]  ;;  %v1294_v8 = vor.u32 %v1693_v63, %v1291_v0  ;;  %v1537_v9 = vld [vmem:[#allocation5 + $0x2d0] sm:$0xf]  ;;  %v1474_v11 = vor.u32 %v1740_v4, %v1473_v1 }
  0x35   :  { %747 = vmatpush.bf16.msra.mxu1 %v1250_v26  ;;  %v1756_v10 = vld [vmem:[#allocation5 + $0x2d4] sm:$0xf0]  ;;  %v1222_v12 = vor.u32 %v1675_v5, %v1219_v6  ;;  %v1691_v13 = vld [vmem:[#allocation5 + $0xd4] sm:$0xf]  ;;  %v1283_v14 = vld [vmem:[#allocation5 + $0xd8] sm:$0xf0] }
  0x36   :  { %735 = vmatpush.bf16.msra.mxu0 %v1178_v33  ;;  %v1465_v15 = vld [vmem:[#allocation5 + $0x240] sm:$0xf]  ;;  %v1738_v16 = vld [vmem:[#allocation5 + $0x244] sm:$0xf0]  ;;  %v1673_v17 = vld [vmem:[#allocation5 + $0x44] sm:$0xf]  ;;  %v1538_v19 = vor.u32 %v1756_v10, %v1537_v9  ;;  %v1286_v20 = vor.u32 %v1691_v13, %v1283_v14 }
  0x37   :  { %761 = vmatpush.bf16.msra.mxu2 %v1306_v38  ;;  %v1211_v18 = vld [vmem:[#allocation5 + $0x48] sm:$0xf0]  ;;  %v1529_v21 = vld [vmem:[#allocation5 + $0x2c0] sm:$0xf]  ;;  %v1754_v22 = vld [vmem:[#allocation5 + $0x2c4] sm:$0xf0]  ;;  %v1466_v24 = vor.u32 %v1738_v16, %v1465_v15 }
  0x38   :  { %774 = vmatpush.bf16.msra.mxu3 %v1370_v39  ;;  %v105_v23 = vld [vmem:[#allocation2 + $0x18] sm:$0xf]  ;;  %v1214_v25 = vor.u32 %v1673_v17, %v1211_v18  ;;  %v1689_v26 = vld [vmem:[#allocation5 + $0xc4] sm:$0xf]  ;;  %v1275_v27 = vld [vmem:[#allocation5 + $0xc8] sm:$0xf0]  ;;  %v1530_v32 = vor.u32 %v1754_v22, %v1529_v21 }
  0x39   :  { %748 = vmatpush.bf16.msra.mxu1 %v1242_v48  ;;  %736 = vmatmul.bf16.vlgmr.msra.gmra.mxu0 %v2018_v58  ;;  %v1457_v28 = vld [vmem:[#allocation5 + $0x230] sm:$0xf]  ;;  %v1736_v29 = vld [vmem:[#allocation5 + $0x234] sm:$0xf0]  ;;  %v1671_v30 = vld [vmem:[#allocation5 + $0x34] sm:$0xf]  ;;  %v220_v33 = vunpack.c.l.b16 %v105_v23  ;;  %v1278_v34 = vor.u32 %v1689_v26, %v1275_v27 }
  0x3a   :  { %780 = vmatpush.bf16.msrb.mxu0 %v1490_v43  ;;  %762 = vmatmul.bf16.vlgmr.msra.gmra.mxu2 %v2016_v55  ;;  %v1203_v31 = vld [vmem:[#allocation5 + $0x38] sm:$0xf0]  ;;  %v1521_v35 = vld [vmem:[#allocation5 + $0x2b0] sm:$0xf]  ;;  %v1752_v36 = vld [vmem:[#allocation5 + $0x2b4] sm:$0xf0]  ;;  %v1458_v37 = vor.u32 %v1736_v29, %v1457_v28 }
  0x3b   :  { %813 = vmatpush.bf16.msrb.mxu2 %v1562_v49  ;;  %775 = vmatmul.bf16.vlgmr.msra.gmra.mxu3 %v2020_v2  ;;  %v1206_v38 = vor.u32 %v1671_v30, %v1203_v31  ;;  %v1687_v39 = vld [vmem:[#allocation5 + $0xb4] sm:$0xf]  ;;  %v1267_v40 = vld [vmem:[#allocation5 + $0xb8] sm:$0xf0]  ;;  %v1449_v41 = vld [vmem:[#allocation5 + $0x220] sm:$0xf]  ;;  %v1522_v45 = vor.u32 %v1752_v36, %v1521_v35  ;;  %v2028_v46 = vpack.c.b16 %v220_v33, %v220_v33 }
  0x3c   :  { %819 = vmatpush.bf16.msrb.mxu3 %v1238_v44  ;;  %749 = vmatmul.bf16.vlgmr.msra.gmra.mxu1 %v2022_v3  ;;  %v1734_v42 = vld [vmem:[#allocation5 + $0x224] sm:$0xf0]  ;;  %v1669_v43 = vld [vmem:[#allocation5 + $0x24] sm:$0xf]  ;;  %v1195_v44 = vld [vmem:[#allocation5 + $0x28] sm:$0xf0]  ;;  %v1270_v47 = vor.u32 %v1687_v39, %v1267_v40 }
  0x3d   :  { %793 = vmatpush.bf16.msrb.mxu1 %v1554_v56  ;;  %v1513_v48 = vld [vmem:[#allocation5 + $0x2a0] sm:$0xf]  ;;  %v1750_v49 = vld [vmem:[#allocation5 + $0x2a4] sm:$0xf0]  ;;  %v1450_v50 = vor.u32 %v1734_v42, %v1449_v41  ;;  %v1198_v51 = vor.u32 %v1669_v43, %v1195_v44  ;;  %v1685_v52 = vld [vmem:[#allocation5 + $0xa4] sm:$0xf] }
  0x3e   :  { %781 = vmatpush.bf16.msrb.mxu0 %v1482_v61  ;;  %v1259_v53 = vld [vmem:[#allocation5 + $0xa8] sm:$0xf0]  ;;  %v1441_v54 = vld [vmem:[#allocation5 + $0x210] sm:$0xf]  ;;  %v1732_v56 = vld [vmem:[#allocation5 + $0x214] sm:$0xf0]  ;;  %v1514_v60 = vor.u32 %v1750_v49, %v1513_v48 }
  0x3f   :  { %832 = vmatpush.bf16.msra.mxu2 %v1302_v57  ;;  %v1667_v57 = vld [vmem:[#allocation5 + $0x14] sm:$0xf]  ;;  %v1187_v59 = vld [vmem:[#allocation5 + $0x18] sm:$0xf0]  ;;  %v1505_v61 = vld [vmem:[#allocation5 + $0x290] sm:$0xf]  ;;  %v1442_v4 = vor.u32 %v1732_v56, %v1441_v54 }
  0x40   :  { %820 = vmatpush.bf16.msrb.mxu3 %v1230_v62  ;;  %v1262_v62 = vor.u32 %v1685_v52, %v1259_v53  ;;  %v1748_v63 = vld [vmem:[#allocation5 + $0x294] sm:$0xf0]  ;;  %v1683_v0 = vld [vmem:[#allocation5 + $0x94] sm:$0xf]  ;;  %v1251_v1 = vld [vmem:[#allocation5 + $0x98] sm:$0xf0]  ;;  %v1190_v5 = vor.u32 %v1667_v57, %v1187_v59 }
  0x41   :  { %794 = vmatpush.bf16.msrb.mxu1 %v1546_v7  ;;  %v1433_v6 = vld [vmem:[#allocation5 + $0x200] sm:$0xf]  ;;  %v1730_v7 = vld [vmem:[#allocation5 + $0x204] sm:$0xf0]  ;;  %v1665_v9 = vld [vmem:[#allocation5 + $0x4] sm:$0xf]  ;;  %v1254_v16 = vor.u32 %v1683_v0, %v1251_v1 }
  0x42   :  { %782 = vmatpush.bf16.msrb.mxu0 %v1474_v11  ;;  %v1179_v10 = vld [vmem:[#allocation5 + $0x8] sm:$0xf0]  ;;  %v1711_v11 = vld [vmem:[#allocation5 + $0x174] sm:$0xf]  ;;  %v1363_v13 = vld [vmem:[#allocation5 + $0x178] sm:$0xf0] }
  0x43   :  { %833 = vmatpush.bf16.msra.mxu2 %v1294_v8  ;;  %v104_v8 = vld [vmem:[#allocation2 + $0x10] sm:$0xff]  ;;  %v1491_v15 = vld [vmem:[#allocation5 + $0x278] sm:$0xf0]  ;;  %v1497_v17 = vld [vmem:[#allocation5 + $0x280] sm:$0xf]  ;;  %v1182_v21 = vor.u32 %v1665_v9, %v1179_v10  ;;  %s1161_s30 = sshll.u32 %s1960_s29, 4  ;;  %s1162_s30 = int_to_ptr.vmem [resolvable:$true] %s1161_s30 }
  0x44   :  { %821 = vmatpush.bf16.msrb.mxu3 %v1222_v12  ;;  %v1506_v12 = vor.u32 %v1748_v63, %v1505_v61  ;;  %v1743_v14 = vld [vmem:[#allocation5 + $0x274] sm:$0xf]  ;;  %v1746_v18 = vld [vmem:[#allocation5 + $0x284] sm:$0xf0]  ;;  %v1681_v22 = vld [vmem:[#allocation5 + $0x84] sm:$0xf]  ;;  %v219_v30 = vunpack.c.h.b16 %v104_v8 }
  0x45   :  { %795 = vmatpush.bf16.msrb.mxu1 %v1538_v19  ;;  %v218_v19 = vunpack.c.l.b16 %v104_v8  ;;  %v1243_v23 = vld [vmem:[#allocation5 + $0x88] sm:$0xf0]  ;;  %v1494_v26 = vor.u32 %v1743_v14, %v1491_v15  ;;  %v1427_v27 = vld [vmem:[#allocation5 + $0x1f8] sm:$0xf0]  ;;  %v1759_v28 = vld [vmem:[#allocation5 + $0x2f4] sm:$0xf]  ;;  %v1498_v31 = vor.u32 %v1746_v18, %v1497_v17 }
  0x46   :  { %783 = vmatpush.bf16.msrb.mxu0 %v1466_v24  ;;  %v1727_v24 = vld [vmem:[#allocation5 + $0x1f4] sm:$0xf]  ;;  %v1555_v29 = vld [vmem:[#allocation5 + $0x2f8] sm:$0xf0]  ;;  %v1355_v33 = vld [vmem:[#allocation5 + $0x168] sm:$0xf0]  ;;  %v1246_v35 = vor.u32 %v1681_v22, %v1243_v23  ;;  %v2034_v41 = vpack.c.b16 %v219_v30, %v219_v30 }
  0x47   :  { %834 = vmatpush.bf16.msra.mxu2 %v1286_v20  ;;  %v1434_v20 = vor.u32 %v1730_v7, %v1433_v6  ;;  %v1741_v36 = vld [vmem:[#allocation5 + $0x264] sm:$0xf]  ;;  %v1558_v39 = vor.u32 %v1759_v28, %v1555_v29  ;;  %v1419_v43 = vld [vmem:[#allocation5 + $0x1e8] sm:$0xf0]  ;;  %v1707_v48 = vld [vmem:[#allocation5 + $0x154] sm:$0xf] }
  0x48   :  { %822 = vmatpush.bf16.msrb.mxu3 %v1214_v25  ;;  %v1366_v25 = vor.u32 %v1711_v11, %v1363_v13  ;;  %v1725_v40 = vld [vmem:[#allocation5 + $0x1e4] sm:$0xf]  ;;  %v1347_v49 = vld [vmem:[#allocation5 + $0x158] sm:$0xf0]  ;;  %v1723_v54 = vld [vmem:[#allocation5 + $0x1d4] sm:$0xf] }
  0x49   :  { %796 = vmatpush.bf16.msrb.mxu1 %v1530_v32  ;;  %v1709_v32 = vld [vmem:[#allocation5 + $0x164] sm:$0xf]  ;;  %v1422_v52 = vor.u32 %v1725_v40, %v1419_v43  ;;  %v1411_v56 = vld [vmem:[#allocation5 + $0x1d8] sm:$0xf0]  ;;  %v1350_v57 = vor.u32 %v1707_v48, %v1347_v49  ;;  %v1755_v59 = vld [vmem:[#allocation5 + $0x2d4] sm:$0xf] }
  0x4a   :  { %784 = vmatpush.bf16.msrb.mxu0 %v1458_v37  ;;  %1567 = vmatmul.msk.bf16.vlgmr.msrb.gmra.mxu2 %vm724_vm0, %v2028_v46  ;;  %v1483_v37 = vld [vmem:[#allocation5 + $0x268] sm:$0xf0]  ;;  %v1358_v42 = vor.u32 %v1709_v32, %v1355_v33  ;;  %v1757_v44 = vld [vmem:[#allocation5 + $0x2e4] sm:$0xf]  ;;  %v1735_v13 = vld [vmem:[#allocation5 + $0x234] sm:$0xf] }
  0x4b   :  { %835 = vmatpush.bf16.msra.mxu2 %v1278_v34  ;;  %v2032_v34 = vpack.c.b16 %v218_v19, %v218_v19  ;;  %v1339_v63 = vld [vmem:[#allocation5 + $0x148] sm:$0xf0]  ;;  %v1737_v0 = vld [vmem:[#allocation5 + $0x244] sm:$0xf]  ;;  %v1459_v14 = vld [vmem:[#allocation5 + $0x238] sm:$0xf0] }
  0x4c   :  { %823 = vmatpush.bf16.msrb.mxu3 %v1206_v38  ;;  %v1430_v38 = vor.u32 %v1727_v24, %v1427_v27  ;;  %v1467_v1 = vld [vmem:[#allocation5 + $0x248] sm:$0xf0]  ;;  %v1721_v6 = vld [vmem:[#allocation5 + $0x1c4] sm:$0xf]  ;;  %v1395_v18 = vld [vmem:[#allocation5 + $0x1b8] sm:$0xf0] }
  0x4d   :  { %797 = vmatpush.bf16.msrb.mxu1 %v1522_v45  ;;  %v1547_v45 = vld [vmem:[#allocation5 + $0x2e8] sm:$0xf0]  ;;  %v1753_v9 = vld [vmem:[#allocation5 + $0x2c4] sm:$0xf]  ;;  %v1470_v11 = vor.u32 %v1737_v0, %v1467_v1  ;;  %v1751_v19 = vld [vmem:[#allocation5 + $0x2b4] sm:$0xf] }
  0x4e   :  { %785 = vmatpush.bf16.msrb.mxu0 %v1450_v50  ;;  %v1739_v50 = vld [vmem:[#allocation5 + $0x254] sm:$0xf]  ;;  %v1550_v53 = vor.u32 %v1757_v44, %v1547_v45  ;;  %v1403_v8 = vld [vmem:[#allocation5 + $0x1c8] sm:$0xf0]  ;;  %v1701_v22 = vld [vmem:[#allocation5 + $0x124] sm:$0xf] }
  0x4f   :  { %836 = vmatpush.bf16.msra.mxu2 %v1270_v47  ;;  %v1486_v47 = vor.u32 %v1741_v36, %v1483_v37  ;;  %v1531_v10 = vld [vmem:[#allocation5 + $0x2c8] sm:$0xf0]  ;;  %v1406_v15 = vor.u32 %v1721_v6, %v1403_v8  ;;  %v1733_v24 = vld [vmem:[#allocation5 + $0x224] sm:$0xf]  ;;  %v1315_v36 = vld [vmem:[#allocation5 + $0x118] sm:$0xf0] }
  0x50   :  { %824 = vmatpush.bf16.msrb.mxu3 %v1198_v51  ;;  %v1475_v51 = vld [vmem:[#allocation5 + $0x258] sm:$0xf0]  ;;  %v1323_v23 = vld [vmem:[#allocation5 + $0x128] sm:$0xf0]  ;;  %v1717_v28 = vld [vmem:[#allocation5 + $0x1a4] sm:$0xf] }
  0x51   :  { %798 = vmatpush.bf16.msrb.mxu1 %v1514_v60  ;;  %v1539_v60 = vld [vmem:[#allocation5 + $0x2d8] sm:$0xf0]  ;;  %v1478_v61 = vor.u32 %v1739_v50, %v1475_v51  ;;  %v1326_v29 = vor.u32 %v1701_v22, %v1323_v23  ;;  %v1387_v30 = vld [vmem:[#allocation5 + $0x1a8] sm:$0xf0]  ;;  %v1731_v37 = vld [vmem:[#allocation5 + $0x214] sm:$0xf] }
  0x52   :  { %786 = vmatpush.bf16.msrb.mxu0 %v1442_v4  ;;  %v1414_v4 = vor.u32 %v1723_v54, %v1411_v56  ;;  %v1515_v32 = vld [vmem:[#allocation5 + $0x2a8] sm:$0xf0]  ;;  %v1379_v44 = vld [vmem:[#allocation5 + $0x198] sm:$0xf0]  ;;  %v1747_v45 = vld [vmem:[#allocation5 + $0x294] sm:$0xf] }
  0x53   :  { %837 = vmatpush.bf16.msra.mxu2 %v1262_v62  ;;  %v1705_v62 = vld [vmem:[#allocation5 + $0x144] sm:$0xf]  ;;  %v1307_v50 = vld [vmem:[#allocation5 + $0x108] sm:$0xf0]  ;;  %v1768_v8 = vld [vmem:[#allocation8 + $0x28] sm:$0xff]  ;;  %s1163_s10 = sshll.u32 %s2062_s7, 4  ;;  %s1164_s10 = int_to_ptr.hbm [resolvable:$true] %s1163_s10 }
  0x54   :  { %825 = vmatpush.bf16.msrb.mxu3 %v1190_v5  ;;  %v1542_v5 = vor.u32 %v1755_v59, %v1539_v60  ;;  %v1342_v7 = vor.u32 %v1705_v62, %v1339_v63  ;;  %v1697_v49 = vld [vmem:[#allocation5 + $0x104] sm:$0xf]  ;;  %v1371_v59 = vld [vmem:[#allocation5 + $0x188] sm:$0xf0] }
  0x55   :  { %799 = vmatpush.bf16.msrb.mxu1 %v1506_v12  ;;  %v1703_v12 = vld [vmem:[#allocation5 + $0x134] sm:$0xf]  ;;  %v1729_v51 = vld [vmem:[#allocation5 + $0x204] sm:$0xf]  ;;  %v1310_v56 = vor.u32 %v1697_v49, %v1307_v50  ;;  %v1499_v62 = vld [vmem:[#allocation5 + $0x288] sm:$0xf0] }
  0x56   :  { %787 = vmatpush.bf16.msrb.mxu0 %v1434_v20  ;;  %v1523_v20 = vld [vmem:[#allocation5 + $0x2b8] sm:$0xf0]  ;;  %v1761_v63 = vld [vmem:[#allocation5 + $0x304] sm:$0xf]  ;;  %v1563_v0 = vld [vmem:[#allocation5 + $0x308] sm:$0xf0] }
  0x57   :  { %838 = vmatpush.bf16.msra.mxu2 %v1254_v16  ;;  %v1719_v16 = vld [vmem:[#allocation5 + $0x1b4] sm:$0xf]  ;;  %v1526_v27 = vor.u32 %v1751_v19, %v1523_v20  ;;  %v1770_v6 = vld [vmem:[#allocation8 + $0x38] sm:$0xff] }
  0x58   :  { %826 = vmatpush.bf16.msrb.mxu3 %v1182_v21  ;;  %v1462_v21 = vor.u32 %v1735_v13, %v1459_v14 }
  0x59   :  { %800 = vmatpush.bf16.msrb.mxu1 %v1498_v31  ;;  %788 = vmatmul.bf16.vlgmr.msrb.gmra.mxu0 %v2032_v34  ;;  %v1749_v31 = vld [vmem:[#allocation5 + $0x2a4] sm:$0xf] }
  0x5a   :  { %845 = vmatpush.bf16.msra.mxu0 %v1366_v25  ;;  %v1451_v25 = vld [vmem:[#allocation5 + $0x228] sm:$0xf0]  ;;  %v1518_v40 = vor.u32 %v1749_v31, %v1515_v32 }
  0x5b   :  { %839 = vmatpush.bf16.msra.mxu2 %v1246_v35  ;;  %827 = vmatmul.bf16.vlgmr.msrb.gmra.mxu3 %v2018_v58  ;;  %v1534_v58 = vor.u32 %v1753_v9, %v1531_v10  ;;  %v1454_v33 = vor.u32 %v1733_v24, %v1451_v25  ;;  %v1699_v35 = vld [vmem:[#allocation5 + $0x114] sm:$0xf]  ;;  %v1764_v10 = vld [vmem:[#allocation8 + $0x8] sm:$0xff] }
  0x5c   :  { %871 = vmatpush.bf16.msra.mxu3 %v1494_v26  ;;  %801 = vmatmul.bf16.vlgmr.msrb.gmra.mxu1 %v2034_v41  ;;  %v1398_v26 = vor.u32 %v1719_v16, %v1395_v18  ;;  %v1318_v43 = vor.u32 %v1699_v35, %v1315_v36  ;;  %v1767_v9 = vld [vmem:[#allocation8 + $0x20] sm:$0xff] }
  0x5d   :  { %858 = vmatpush.bf16.msra.mxu1 %v1430_v38  ;;  %v1443_v38 = vld [vmem:[#allocation5 + $0x218] sm:$0xf0] }
  0x5e   :  { %846 = vmatpush.bf16.msra.mxu0 %v1358_v42  ;;  %840 = vmatmul.bf16.vlgmr.msra.gmra.mxu2 %v2022_v3  ;;  %v1331_v3 = vld [vmem:[#allocation5 + $0x138] sm:$0xf0]  ;;  %v1715_v42 = vld [vmem:[#allocation5 + $0x194] sm:$0xf]  ;;  %v1446_v48 = vor.u32 %v1731_v37, %v1443_v38 }
  0x5f   :  { %884 = vmatpush.bf16.msrb.mxu2 %v1558_v39  ;;  %v1334_v17 = vor.u32 %v1703_v12, %v1331_v3  ;;  %v1390_v39 = vor.u32 %v1717_v28, %v1387_v30  ;;  %v1776_v30 = vld [vmem:[#allocation8 + $0x68] sm:$0xff] }
  0x60   :  { %872 = vmatpush.bf16.msra.mxu3 %v1486_v47  ;;  %v1507_v47 = vld [vmem:[#allocation5 + $0x298] sm:$0xf0] }
  0x61   :  { %859 = vmatpush.bf16.msra.mxu1 %v1422_v52  ;;  %v1435_v52 = vld [vmem:[#allocation5 + $0x208] sm:$0xf0]  ;;  %v1510_v54 = vor.u32 %v1747_v45, %v1507_v47  ;;  %v1771_v45 = vld [vmem:[#allocation8 + $0x40] sm:$0xff] }
  0x62   :  { %847 = vmatpush.bf16.msra.mxu0 %v1350_v57  ;;  %v1713_v57 = vld [vmem:[#allocation5 + $0x184] sm:$0xf]  ;;  %v1438_v60 = vor.u32 %v1729_v51, %v1435_v52 }
  0x63   :  { %885 = vmatpush.bf16.msrb.mxu2 %v1550_v53  ;;  %v1382_v53 = vor.u32 %v1715_v42, %v1379_v44  ;;  %v1374_v1 = vor.u32 %v1713_v57, %v1371_v59  ;;  %v1772_v44 = vld [vmem:[#allocation8 + $0x48] sm:$0xff] }
  0x64   :  { %873 = vmatpush.bf16.msra.mxu3 %v1478_v61  ;;  %v1745_v61 = vld [vmem:[#allocation5 + $0x284] sm:$0xf] }
  0x65   :  { %860 = vmatpush.bf16.msra.mxu1 %v1414_v4  ;;  %v1502_v4 = vor.u32 %v1745_v61, %v1499_v62 }
  0x66   :  { %848 = vmatpush.bf16.msra.mxu0 %v1342_v7  ;;  %v1769_v7 = vld [vmem:[#allocation8 + $0x30] sm:$0xff] }
  0x67   :  { %886 = vmatpush.bf16.msrb.mxu2 %v1542_v5  ;;  %v1566_v5 = vor.u32 %v1761_v63, %v1563_v0 }
  0x68   :  { %874 = vmatpush.bf16.msra.mxu3 %v1470_v11 }
  0x69   :  { %861 = vmatpush.bf16.msra.mxu1 %v1406_v15 }
  0x6a   :  { %849 = vmatpush.bf16.msra.mxu0 %v1334_v17 }
  0x6b   :  { %887 = vmatpush.bf16.msrb.mxu2 %v1534_v58 }
  0x6c   :  { %875 = vmatpush.bf16.msra.mxu3 %v1462_v21  ;;  %v1778_v21 = vld [vmem:[#allocation8 + $0x78] sm:$0xff] }
  0x6d   :  { %862 = vmatpush.bf16.msra.mxu1 %v1398_v26  ;;  %v1777_v26 = vld [vmem:[#allocation8 + $0x70] sm:$0xff] }
  0x6e   :  { %850 = vmatpush.bf16.msra.mxu0 %v1326_v29 }
  0x6f   :  { %888 = vmatpush.bf16.msrb.mxu2 %v1526_v27 }
  0x70   :  { %876 = vmatpush.bf16.msra.mxu3 %v1454_v33  ;;  %v1775_v33 = vld [vmem:[#allocation8 + $0x60] sm:$0xff] }
  0x71   :  { %863 = vmatpush.bf16.msra.mxu1 %v1390_v39  ;;  %v1774_v39 = vld [vmem:[#allocation8 + $0x58] sm:$0xff] }
  0x72   :  { %851 = vmatpush.bf16.msra.mxu0 %v1318_v43 }
  0x73   :  { %889 = vmatpush.bf16.msrb.mxu2 %v1518_v40  ;;  %v1773_v40 = vld [vmem:[#allocation8 + $0x50] sm:$0xff] }
  0x74   :  { %877 = vmatpush.bf16.msra.mxu3 %v1446_v48 }
  0x75   :  { %864 = vmatpush.bf16.msra.mxu1 %v1382_v53 }
  0x76   :  { %852 = vmatpush.bf16.msra.mxu0 %v1310_v56 }
  0x77   :  { %890 = vmatpush.bf16.msrb.mxu2 %v1510_v54 }
  0x78   :  { %878 = vmatpush.bf16.msra.mxu3 %v1438_v60 }
  0x79   :  { %865 = vmatpush.bf16.msra.mxu1 %v1374_v1  ;;  %853 = vmatmul.bf16.vlgmr.msra.gmra.mxu0 %v2016_v55  ;;  %v1766_v55 = vld [vmem:[#allocation8 + $0x18] sm:$0xff] }
  0x7b   :  { %879 = vmatmul.bf16.vlgmr.msra.gmra.mxu3 %v2032_v34  ;;  %891 = vmatpush.bf16.msrb.mxu2 %v1502_v4  ;;  %v1765_v34 = vld [vmem:[#allocation8 + $0x10] sm:$0xff] }
  0x7c   :  { %866 = vmatmul.bf16.vlgmr.msra.gmra.mxu1 %v2020_v2  ;;  %1059 = vmatpush.bf16.msrb.mxu3 %v1778_v21 }
  0x7d   :  { %1046 = vmatpush.bf16.msrb.mxu1 %v1770_v6 }
  0x7e   :  { %892 = vmatmul.bf16.vlgmr.msrb.gmra.mxu2 %v2034_v41  ;;  %v1763_v41 = vld [vmem:[#allocation8] sm:$0xff] }
  0x7f   :  { %904 = vmatpush.bf16.msra.mxu2 %v1566_v5 }
  0x80   :  { %1060 = vmatpush.bf16.msrb.mxu3 %v1777_v26 }
  0x81   :  { %1047 = vmatpush.bf16.msrb.mxu1 %v1769_v7  ;;  %v1786_v7 = vld [vmem:[#allocation10 + $0x38] sm:$0xff] }
  0x82   :  { %1142 = vmatpush.bf16.msrb.mxu0 %v1786_v7 }
  0x84   :  { %1061 = vmatpush.bf16.msrb.mxu3 %v1776_v30 }
  0x85   :  { %1048 = vmatpush.bf16.msrb.mxu1 %v1768_v8  ;;  %v1785_v8 = vld [vmem:[#allocation10 + $0x30] sm:$0xff] }
  0x86   :  { %1143 = vmatpush.bf16.msrb.mxu0 %v1785_v8 }
  0x88   :  { %1062 = vmatpush.bf16.msrb.mxu3 %v1775_v33 }
  0x89   :  { %1049 = vmatpush.bf16.msrb.mxu1 %v1767_v9  ;;  %v1784_v9 = vld [vmem:[#allocation10 + $0x28] sm:$0xff] }
  0x8a   :  { %1144 = vmatpush.bf16.msrb.mxu0 %v1784_v9 }
  0x8c   :  { %1063 = vmatpush.bf16.msrb.mxu3 %v1774_v39 }
  0x8d   :  { %1050 = vmatpush.bf16.msrb.mxu1 %v1766_v55  ;;  %v1783_v55 = vld [vmem:[#allocation10 + $0x20] sm:$0xff] }
  0x8e   :  { %1568 = vmatmul.msk.bf16.vlgmr.msra.gmra.mxu2 %vm724_vm0, %v2028_v46  ;;  %v204_v46 = vld [vmem:[#allocation7] sm:$0x3]  ;;  %1145 = vmatpush.bf16.msrb.mxu0 %v1783_v55 }
  0x8f   :  { %v206_v15 = vperm.slane %v204_v46, 0  ;;  %v207_v49 = vperm.slane %v204_v46, 1  ;;  %v1797_v46 = vld [vmem:[%s2059_s4] ss:$0 sm:$0xff] }
  0x90   :  { %1064 = vmatpush.bf16.msrb.mxu3 %v1773_v40 }
  0x91   :  { %1051 = vmatpush.bf16.msrb.mxu1 %v1765_v34  ;;  %v1782_v34 = vld [vmem:[#allocation10 + $0x18] sm:$0xff] }
  0x92   :  { %1146 = vmatpush.bf16.msrb.mxu0 %v1782_v34 }
  0x94   :  { %1065 = vmatpush.bf16.msrb.mxu3 %v1772_v44 }
  0x95   :  { %1052 = vmatpush.bf16.msrb.mxu1 %v1764_v10  ;;  %v1781_v10 = vld [vmem:[#allocation10 + $0x10] sm:$0xff] }
  0x96   :  { %1147 = vmatpush.bf16.msrb.mxu0 %v1781_v10 }
  0x98   :  { %1066 = vmatpush.bf16.msrb.mxu3 %v1771_v45 }
  0x99   :  { %1053 = vmatpush.bf16.msrb.mxu1 %v1763_v41  ;;  %v1780_v41 = vld [vmem:[#allocation10 + $0x8] sm:$0xff] }
  0x9a   :  { %1148 = vmatpush.bf16.msrb.mxu0 %v1780_v41 }
  0xb6   :  { %v737_v11 = vpop.f32.mrf.mxu0 }
  0xb7   :  { %v738_v16 = vadd.f32 %v737_v11, %v206_v15 }
  0xb9   :  { %v750_v2 = vpop.f32.mrf.mxu1 }
  0xba   :  { %v751_v18 = vadd.f32 %v750_v2, %v738_v16 }
  0xbd   :  { %v763_v12 = vpop.f32.mrf.mxu2 }
  0xbe   :  { %v776_v3 = vpop.f32.mrf.mxu3  ;;  %v739_v13 = vpop.f32.mrf.mxu0  ;;  %v764_v20 = vadd.f32 %v763_v12, %v751_v18  ;;  %v1779_v12 = vld [vmem:[#allocation10] sm:$0xff] }
  0xbf   :  { %1149 = vmatpush.bf16.msrb.mxu0 %v1779_v12 }
  0xc0   :  { %v777_v22 = vadd.f32 %v776_v3, %v764_v20 }
  0xc1   :  { %v752_v14 = vpop.f32.mrf.mxu1 }
  0xc5   :  { %v765_v58 = vpop.f32.mrf.mxu2 }
  0xc6   :  { %v778_v17 = vpop.f32.mrf.mxu3 }
  0xc7   :  { %v1798_v17 = vld [vmem:[%s2061_s6] ss:$0 sm:$0xff] }
  0xcd   :  { %v815_v19 = vpop.f32.mrf.mxu2 }
  0xd5   :  { %v817_v25 = vpop.f32.mrf.mxu2 }
  0xd6   :  { %v789_v23 = vpop.f32.mrf.mxu0 }
  0xd7   :  { %v790_v24 = vadd.f32 %v789_v23, %v777_v22 }
  0xd9   :  { %v802_v27 = vpop.f32.mrf.mxu1 }
  0xda   :  { %v803_v28 = vadd.f32 %v802_v27, %v790_v24 }
  0xdc   :  { %v816_v29 = vadd.f32 %v815_v19, %v803_v28 }
  0xde   :  { %v910_v31 = vmax.f32 %v816_v29, 0.0  ;;  %v791_v32 = vpop.f32.mrf.mxu0  ;;  %v828_v37 = vpop.f32.mrf.mxu3 }
  0xdf   :  { %v829_v52 = vadd.f32 %v828_v37, %v207_v49 }
  0xe0   :  { %v912_v35 = vpack.c.bf16 %v910_v31, %v910_v31 }
  0xe1   :  { %v841_v36 = vpop.f32.mrf.mxu2  ;;  %v804_v38 = vpop.f32.mrf.mxu1 }
  0xe2   :  { %1054 = vmatmul.bf16.vlgmr.msrb.gmra.mxu1 %v912_v35  ;;  %v842_v56 = vadd.f32 %v841_v36, %v829_v52 }
  0xe6   :  { %v830_v43 = vpop.f32.mrf.mxu3 }
  0xe9   :  { %v843_v42 = vpop.f32.mrf.mxu2 }
  0xf6   :  { %v854_v47 = vpop.f32.mrf.mxu0 }
  0xf7   :  { %v855_v57 = vadd.f32 %v854_v47, %v842_v56 }
  0xf9   :  { %v867_v48 = vpop.f32.mrf.mxu1 }
  0xfa   :  { %v868_v61 = vadd.f32 %v867_v48, %v855_v57 }
  0xfe   :  { %v880_v50 = vpop.f32.mrf.mxu3  ;;  %v856_v51 = vpop.f32.mrf.mxu0 }
  0xff   :  { %v881_v62 = vadd.f32 %v880_v50, %v868_v61 }
 0x101   :  { %v893_v53 = vpop.f32.mrf.mxu2  ;;  %v869_v54 = vpop.f32.mrf.mxu1 }
 0x102   :  { %v894_v63 = vadd.f32 %v893_v53, %v881_v62 }
 0x106   :  { %v882_v59 = vpop.f32.mrf.mxu3 }
 0x109   :  { %v895_v60 = vpop.f32.mrf.mxu2 }
 0x111   :  { %v906_v0 = vpop.f32.mrf.mxu2 }
 0x112   :  { %v907_v1 = vadd.f32 %v906_v0, %v894_v63 }
 0x114   :  { %v911_v4 = vmax.f32 %v907_v1, 0.0 }
 0x116   :  { %v913_v5 = vpack.c.bf16 %v911_v4, %v911_v4 }
 0x118   :  { %1067 = vmatmul.bf16.vlgmr.msrb.gmra.mxu3 %v913_v5 }
 0x119   :  { %v908_v6 = vpop.f32.mrf.mxu2 }
 0x15f   :  { %v1055_v11 = vpop.f32.mrf.mxu1 }
 0x160   :  { %v1056_v3 = vadd.f32 %v1797_v46, %v1055_v11 }
 0x167   :  { %v1057_v2 = vpop.f32.mrf.mxu1 }
 0x19b   :  { %v1068_v13 = vpop.f32.mrf.mxu3 }
 0x19c   :  { %v1069_v14 = vadd.f32 %v1068_v13, %v1056_v3 }
 0x19e   :  { %v1072_v15 = vmax.f32 %v1069_v14, 0.0 }
 0x1a0   :  { %v1073_v58 = vpack.c.bf16 %v1072_v15, %v1072_v15 }
 0x1a2   :  { %1150 = vmatmul.bf16.vlgmr.msrb.gmra.mxu0 %v1073_v58 }
 0x1a3   :  { %v1070_v16 = vpop.f32.mrf.mxu3 }
 0x21f   :  { %v1151_v18 = vpop.f32.mrf.mxu0 }
 0x220   :  { %v1152_v19 = vadd.f32 %v1798_v17, %v1151_v18 }
 0x222   :  { %1155 = vst [vmem:[#allocation11] sm:$0xff] %v1152_v19 }
 0x223   :  { %1166 = dma.vmem_to_hbm [thread:$0]  %s1162_s30, 128, %s1164_s10, [#allocation4]  }
 0x227   :  { %v1153_v20 = vpop.f32.mrf.mxu0 }
 0x228   :  { %1949 = dma.done.wait [#allocation4], 128  }
 0x229   :  { %1950 = vsyncadd [#allocation4], 4294967168 }
 0x22a   :  { %1171 = vsyncpa [#allocation3], 1 }
 0x22b   :  { %1172 = vsyncpa [#allocation6], 1 }
 0x22c   :  { %1173 = vsyncpa [#allocation9], 1 }
 0x22d   :  { %1174 = vsyncpa [#allocation4], 1 }

</bundles_post_ra>
